<compile_context>
chip_gen: v7x
topology: tpu7x:2x2x1
jax: 0.10.0
libtpu: 0.0.40
codegen_flags: <defaults>
</compile_context>

<pallas_src>
import jax
import jax.numpy as jnp
from jax import lax
from jax.experimental import pallas as pl
from jax.experimental.pallas import tpu as pltpu


def _lddt_proj_kernel(x_ref, w_ref, b_ref, o_ref):
    # x_ref: (1, tl, n_feat)   activation tile for this (batch, L-tile)
    # w_ref: (n_bin, n_feat)   full weight (resident across grid steps)
    # b_ref: (n_bin, 1)        bias column (resident across grid steps)
    # o_ref: (1, n_bin, tl)    transposed logits tile -> lane-dense stores
    x_tile = x_ref[0]                                   # (tl, n_feat)
    acc = lax.dot_general(
        w_ref[...], x_tile,
        dimension_numbers=(((1,), (1,)), ((), ())),     # contract over n_feat
        preferred_element_type=jnp.float32,
    )                                                   # (n_bin, tl)
    o_ref[0] = (acc + b_ref[...]).astype(o_ref.dtype)


def lddt_forward(x, weight, bias, *, tile_l=1024):
    """LDDTNetwork.forward: Linear(n_feat -> n_bin) then permute(0, 2, 1).

    x:      (B, L, n_feat) f32
    weight: (n_bin, n_feat)  (torch nn.Linear layout)
    bias:   (n_bin,)
    returns (B, n_bin, L)
    """
    B, L, n_feat = x.shape
    n_bin = weight.shape[0]

    # L-tile: full L when small (full-dim blocks are always layout-legal);
    # otherwise a lane-dense multiple of 128.  Ragged tails are handled by
    # the cdiv grid + Pallas boundary masking (no explicit padding copies).
    if L <= tile_l:
        tl = L
    else:
        assert tile_l % 128 == 0, "tile_l must be a multiple of 128"
        tl = tile_l
    num_l_tiles = pl.cdiv(L, tl)

    b_col = bias.reshape(n_bin, 1)

    # Advisory cost estimate so XLA schedules neighbors around this
    # memory-bound custom call sensibly.
    itemsize = jnp.dtype(x.dtype).itemsize
    cost = pl.CostEstimate(
        flops=2 * B * L * n_feat * n_bin,
        transcendentals=0,
        bytes_accessed=(x.size + weight.size + bias.size
                        + B * n_bin * L) * itemsize,
    )

    return pl.pallas_call(
        _lddt_proj_kernel,
        out_shape=jax.ShapeDtypeStruct((B, n_bin, L), x.dtype),
        grid_spec=pl.GridSpec(
            grid=(B, num_l_tiles),
            in_specs=[
                pl.BlockSpec((1, tl, n_feat), lambda b, i: (b, i, 0)),
                pl.BlockSpec((n_bin, n_feat), lambda b, i: (0, 0)),
                pl.BlockSpec((n_bin, 1), lambda b, i: (0, 0)),
            ],
            out_specs=pl.BlockSpec((1, n_bin, tl), lambda b, i: (b, 0, i)),
        ),
        compiler_params=pltpu.CompilerParams(
            dimension_semantics=("parallel", "parallel")),
        cost_estimate=cost,
    )(x, weight, b_col)
    # TODO(synk): optional bf16 I/O (keep f32 MXU accumulator) would halve HBM
    # traffic on v6e/v7x if the surrounding RF2NA graph tolerates it.


if __name__ == "__main__":
    # Small shapes consistent with the forward: (batch, seq, n_feat).
    B, L, n_feat, n_bin = 2, 8, 32, 50

    key = jax.random.PRNGKey(0)
    kx, kw, kb, kx2 = jax.random.split(key, 4)
    x = jax.random.normal(kx, (B, L, n_feat), dtype=jnp.float32)

    # 1) Module default: reset_parameter() zero-inits weight and bias.
    w0 = jnp.zeros((n_bin, n_feat), dtype=jnp.float32)
    b0 = jnp.zeros((n_bin,), dtype=jnp.float32)
    out0 = jax.block_until_ready(lddt_forward(x, w0, b0))
    ref0 = jnp.transpose(x @ w0.T + b0, (0, 2, 1))
    assert out0.shape == (B, n_bin, L), out0.shape
    assert jnp.allclose(out0, ref0, atol=1e-5), "mismatch vs reference (zero init)"

    # 2) Non-trivial parameters to exercise the matmul + bias path.
    w1 = 0.1 * jax.random.normal(kw, (n_bin, n_feat), dtype=jnp.float32)
    b1 = 0.1 * jax.random.normal(kb, (n_bin,), dtype=jnp.float32)
    out1 = jax.block_until_ready(lddt_forward(x, w1, b1))
    ref1 = jnp.transpose(x @ w1.T + b1, (0, 2, 1))
    assert out1.shape == (B, n_bin, L), out1.shape
    assert jnp.allclose(out1, ref1, atol=1e-4, rtol=1e-4), "mismatch vs reference"

    # 3) Ragged L (L not a multiple of the tile) to exercise boundary masking.
    L2 = 200
    x2 = jax.random.normal(kx2, (B, L2, n_feat), dtype=jnp.float32)
    out2 = jax.block_until_ready(lddt_forward(x2, w1, b1, tile_l=128))
    ref2 = jnp.transpose(x2 @ w1.T + b1, (0, 2, 1))
    assert out2.shape == (B, n_bin, L2), out2.shape
    assert jnp.allclose(out2, ref2, atol=1e-4, rtol=1e-4), "mismatch (ragged L)"

    print("KERNEL_OK")
</pallas_src>

<mosaic_0001>
module attributes {stable_mosaic.version = 11 : i64} {
  func.func @_lddt_proj_kernel(%arg0: i32, %arg1: i32, %arg2: memref<1x8x32xf32, #tpu.memory_space<vmem>>, %arg3: memref<50x32xf32, #tpu.memory_space<vmem>>, %arg4: memref<50x1xf32, #tpu.memory_space<vmem>>, %arg5: memref<1x50x8xf32, #tpu.memory_space<vmem>>) attributes {dimension_semantics = [#tpu.dimension_semantics<parallel>, #tpu.dimension_semantics<parallel>], iteration_bounds = array<i64: 2, 1>, scalar_prefetch = 0 : i64, scratch_operands = 0 : i64, tpu.core_type = #tpu.core_type<tc>, window_params = [{transform_indices = @transform_0, window_bounds = array<i64: 1, 8, 32>}, {pipeline_mode = #tpu.pipeline_mode<synchronous>, transform_indices = @transform_1, window_bounds = array<i64: 50, 32>}, {pipeline_mode = #tpu.pipeline_mode<synchronous>, transform_indices = @transform_2, window_bounds = array<i64: 50, 1>}, {transform_indices = @transform_3, window_bounds = array<i64: 1, 50, 8>}]} {
    %c0 = arith.constant 0 : index
    %c0_0 = arith.constant 0 : index
    %c0_1 = arith.constant 0 : index
    %0 = vector.load %arg2[%c0, %c0_0, %c0_1] : memref<1x8x32xf32, #tpu.memory_space<vmem>>, vector<1x8x32xf32>
    %1 = vector.shape_cast %0 : vector<1x8x32xf32> to vector<8x32xf32>
    %c0_2 = arith.constant 0 : index
    %c0_3 = arith.constant 0 : index
    %2 = vector.load %arg3[%c0_2, %c0_3] : memref<50x32xf32, #tpu.memory_space<vmem>>, vector<50x32xf32>
    %cst = arith.constant dense<0.000000e+00> : vector<50x8xf32>
    %3 = tpu.matmul %2, %1, %cst {dimension_numbers = #tpu.dot_dimension_numbers<[1], [1], [0], [0], [0, 0, 1, 0], [], []>} : vector<50x32xf32>, vector<8x32xf32>, vector<50x8xf32> -> vector<50x8xf32>
    %c0_4 = arith.constant 0 : index
    %c0_5 = arith.constant 0 : index
    %4 = vector.load %arg4[%c0_4, %c0_5] : memref<50x1xf32, #tpu.memory_space<vmem>>, vector<50x1xf32>
    %5 = vector.broadcast %4 : vector<50x1xf32> to vector<50x8xf32>
    %6 = arith.addf %3, %5 : vector<50x8xf32>
    %c0_6 = arith.constant 0 : index
    %c0_7 = arith.constant 0 : index
    %c0_8 = arith.constant 0 : index
    %7 = vector.load %arg5[%c0_6, %c0_7, %c0_8] : memref<1x50x8xf32, #tpu.memory_space<vmem>>, vector<1x50x8xf32>
    %8 = vector.shape_cast %7 : vector<1x50x8xf32> to vector<50x8xf32>
    %9 = vector.shape_cast %6 : vector<50x8xf32> to vector<1x50x8xf32>
    tpu.vector_store %arg5[%c0_6, %c0_7, %c0_8], %9 {strides = array<i32>} : memref<1x50x8xf32, #tpu.memory_space<vmem>>, vector<1x50x8xf32>,
    return
  }
  func.func @transform_0(%arg0: i32, %arg1: i32) -> (i32, i32, i32) {
    %c0_i32 = arith.constant 0 : i32
    %c0_i32_0 = arith.constant 0 : i32
    return %arg0, %arg1, %c0_i32 : i32, i32, i32
  }
  func.func @transform_1(%arg0: i32, %arg1: i32) -> (i32, i32) {
    %c0_i32 = arith.constant 0 : i32
    %c0_i32_0 = arith.constant 0 : i32
    %c0_i32_1 = arith.constant 0 : i32
    return %c0_i32, %c0_i32_0 : i32, i32
  }
  func.func @transform_2(%arg0: i32, %arg1: i32) -> (i32, i32) {
    %c0_i32 = arith.constant 0 : i32
    %c0_i32_0 = arith.constant 0 : i32
    %c0_i32_1 = arith.constant 0 : i32
    return %c0_i32, %c0_i32_0 : i32, i32
  }
  func.func @transform_3(%arg0: i32, %arg1: i32) -> (i32, i32, i32) {
    %c0_i32 = arith.constant 0 : i32
    %c0_i32_0 = arith.constant 0 : i32
    return %arg0, %c0_i32, %arg1 : i32, i32, i32
  }
}

</mosaic_0001>

<bundles_post_ra>
// kernel: tpu_custom_call.1
= control target key start
LH: loop header
LB: loop body
LE: loop exit
PB: predicated region body
PF: predicated region fallthrough
CT: control target
= control target key end

     0   :  { %s590_s12 = smov 0   ;;  %s592_s13 = smov 0   ;;  %s700_s0 = inlined_call_operand.vmem [shape: f32[2,8,32], index: 0, kind: input, shape index: {}]   ;;  %s701_s1 = inlined_call_operand.vmem [shape: f32[50,32], index: 1, kind: input, shape index: {}]   ;;  %s702_s2 = inlined_call_operand.vmem [shape: f32[50,1], index: 2, kind: input, shape index: {}]   ;;  %s703_s3 = inlined_call_operand.vmem [shape: f32[2,50,8], index: 3, kind: output, shape index: {}]  }
   0x1   :  { %s594_s14 = smov 0  }
   0x2 LB: > { %s25_s15 = sadd.s32 1, %s561_s13  ;;  %p467_p0 = scmp.ge.s32.totalorder %s565_s14, 1  ;;  %s565_s14 = sphi %s594_s14, %s13_s14   ;;  %s561_s13 = sphi %s592_s13, %s705_s13   ;;  %s557_s12 = sphi %s590_s12, %s704_s12  }
   0x3   : > { %p27_p1 = scmp.ge.s32.totalorder %s25_s15, 2  ;;  %p155_p2 = scmp.lt.s32.totalorder %s565_s14, 3 }
   0x5   : > { %s707_s15 = smov (%p27_p1, %s25_s15), 0  ;;  %p156_p3 = pnand %p467_p0, %p155_p2 }
   0x6   : > { %p184_p4 = scmp.lt.s32.totalorder (!%p156_p3), %s557_s12, 1  ;;  %v567_v0 = vmov (!%p156_p3), 0.0   ;;  %vm568_vm0 = vmmov (!%p156_p3), 0   ;;  %v207_v1 = vld [vmem:[%s702_s2] sm:$0xff] (!%p156_p3)  ;;  %v569_v2 = vmov (!%p156_p3), 0   ;;  %v209_v3 = vld [vmem:[%s702_s2 + $0x10] sm:$0xff] (!%p156_p3) }
   0x7   : > { %159 = sbr.rel (%p156_p3) target bundleno = 248 (0xf8), region = 32  ;;  %488 = vmatprep.subr.mxu0 (!%p156_p3), %v567_v0  ;;  %511 = vmatprep.subr.mxu1 (!%p156_p3), %v567_v0  ;;  %vm249_vm1 = vcmask (!%p156_p3), 261120   ;;  %v208_v4 = vld [vmem:[%s702_s2 + $0x8] sm:$0xff] (!%p156_p3)  ;;  %v210_v5 = vld [vmem:[%s702_s2 + $0x18] sm:$0xff] (!%p156_p3)  ;;  %v200_v7 = vld [vmem:[%s701_s1] sm:$0xff] (!%p156_p3)  ;;  %vm374_vm2 = vcmask (!%p156_p3), 64512  }
   0x8   : > { %490 = vmatprep.mubr.msk.f32.mxu0 (!%p156_p3), %vm568_vm0, %v567_v0  ;;  %502 = vmatprep.mubr.msk.f32.mxu1 (!%p156_p3), %vm568_vm0, %v567_v0  ;;  %v204_v8 = vld [vmem:[%s701_s1 + $0x20] sm:$0xff] (!%p156_p3)  ;;  %v212_v10 = vld [vmem:[%s702_s2 + $0x28] sm:$0xff] (!%p156_p3)  ;;  %v213_v13 = vld [vmem:[%s702_s2 + $0x30] sm:$0x3] (!%p156_p3)  ;;  %vm381_vm3 = vcmask (!%p156_p3), 58368  }
   0x9   : > { %541 = vset.pattern.permute.xlu0 (!%p156_p3), %v569_v2  ;;  %542 = vset.pattern.permute.xlu1 (!%p156_p3), %v569_v2  ;;  %v211_v9 = vld [vmem:[%s702_s2 + $0x20] sm:$0xff] (!%p156_p3)  ;;  %v201_v11 = vld [vmem:[%s701_s1 + $0x8] sm:$0xff] (!%p156_p3)  ;;  %v202_v14 = vld [vmem:[%s701_s1 + $0x10] sm:$0xff] (!%p156_p3) }
   0xa   : > { %216 = vperm.xlu0 (!%p156_p3), %541, %v207_v1   ;;  %226 = vperm.xlu1 (!%p156_p3), %542, %v209_v3   ;;  %v205_v12 = vld [vmem:[%s701_s1 + $0x28] sm:$0xff] (!%p156_p3)  ;;  %v206_v15 = vld [vmem:[%s701_s1 + $0x30] sm:$0x3] (!%p156_p3)  ;;  %v203_v16 = vld [vmem:[%s701_s1 + $0x18] sm:$0xff] (!%p156_p3) }
   0xe   : > { %s709_s12 = smov (!%p184_p4, %s557_s12), 1  ;;  %221 = vperm.xlu0 %541, %v208_v4   ;;  %231 = vperm.xlu1 %542, %v210_v5  }
   0xf   : > { %s468_s20 = sshll.u32 %s709_s12, 3  ;;  %s513_s25 = smul.u32 56, %s709_s12 }
  0x10   : > { %s190_s23 = scalar_lea.vmem %s700_s0, %s468_s20 }
  0x11   : > { %v199_v6 = vld [vmem:[%s190_s23] sm:$0xff]  ;;  %s676_s28 = scalar_lea.vmem %s703_s3, %s513_s25 }
  0x12   : > { %489 = vmatpush3.xpose.msk.msra.mxu0 %vm249_vm1, %v199_v6  ;;  %512 = vmatpush3.xpose.msk.msra.mxu1 %vm249_vm1, %v199_v6 }
  0x13   : > { %236 = vperm.xlu0 %541, %v211_v9   ;;  %241 = vperm.xlu1 %542, %v212_v10  }
  0x15   : > { %491 = vmatmul.mubr.msk.f32.vlgmr.msra.gmra.mrb[0].mxu0 %vm249_vm1, %v200_v7  ;;  %503 = vmatmul.mubr.msk.f32.vlgmr.msra.gmra.mrb[0].mxu1 %vm249_vm1, %v204_v8 }
  0x16   : > { %493 = vmatprep.mubr.msk.f32.mxu0 %vm568_vm0, %v567_v0  ;;  %505 = vmatprep.mubr.msk.f32.mxu1 %vm568_vm0, %v567_v0 }
  0x17   : > { %246 = vperm.xlu0 %541, %v213_v13  }
  0x19   : > { %494 = vmatmul.mubr.msk.f32.gmra.mrb[2].mxu0 %vm249_vm1, %v201_v11  ;;  %506 = vmatmul.mubr.msk.f32.gmra.mrb[2].mxu1 %vm249_vm1, %v205_v12 }
  0x1a   : > { %496 = vmatprep.mubr.msk.f32.mxu0 %vm568_vm0, %v567_v0  ;;  %508 = vmatprep.mubr.msk.f32.mxu1 %vm568_vm0, %v567_v0 }
  0x1d   : > { %497 = vmatmul.mubr.msk.f32.gmra.mrb[4].mxu0 %vm249_vm1, %v202_v14  ;;  %509 = vmatmul.mubr.msk.f32.gmra.mrb[4].mxu1 %vm249_vm1, %v206_v15 }
  0x1e   : > { %499 = vmatprep.mubr.msk.f32.mxu0 %vm568_vm0, %v567_v0 }
  0x21   : > { %500 = vmatmul.mubr.msk.f32.gmra.mrb[6].mxu0 %vm249_vm1, %v203_v16 }
  0x89   : > { %v217_v17 = vpop.permute.xlu0 %216  ;;  %v227_v18 = vpop.permute.xlu1 %226 }
  0x8d   : > { %v222_v19 = vpop.permute.xlu0 %221  ;;  %v232_v20 = vpop.permute.xlu1 %231 }
  0x92   : > { %v237_v21 = vpop.permute.xlu0 %236  ;;  %v242_v28 = vpop.permute.xlu1 %241 }
  0x96   : > { %v247_v35 = vpop.permute.xlu0 %246 }
  0xe8   : > { %v340_v22 = vpop.f32.mrb[0].mxu0  ;;  %v360_v23 = vpop.f32.mrb[0].mxu1 }
  0xe9   : > { %v341_v24 = vadd.f32 %v340_v22, %v217_v17  ;;  %v361_v25 = vadd.f32 %v360_v23, %v237_v21  ;;  %v492_v26 = vpop.f32.mrb[1].mxu0  ;;  %v504_v27 = vpop.f32.mrb[1].mxu1 }
  0xeb   : > { %375 = vst.msk [vmem:[%s676_s28] sm:$0xff] %vm374_vm2, %v341_v24  ;;  %379 = vst.msk [vmem:[%s676_s28 + $0x20] sm:$0xff] %vm374_vm2, %v361_v25 }
  0xec   : > { %v345_v29 = vpop.f32.mrb[2].mxu0  ;;  %v365_v30 = vpop.f32.mrb[2].mxu1 }
  0xed   : > { %v346_v31 = vadd.f32 %v345_v29, %v222_v19  ;;  %v366_v32 = vadd.f32 %v365_v30, %v242_v28  ;;  %v495_v33 = vpop.f32.mrb[3].mxu0  ;;  %v507_v34 = vpop.f32.mrb[3].mxu1 }
  0xef   : > { %376 = vst.msk [vmem:[%s676_s28 + $0x8] sm:$0xff] %vm374_vm2, %v346_v31  ;;  %380 = vst.msk [vmem:[%s676_s28 + $0x28] sm:$0xff] %vm374_vm2, %v366_v32 }
  0xf0   : > { %v350_v36 = vpop.f32.mrb[4].mxu0  ;;  %v370_v37 = vpop.f32.mrb[4].mxu1 }
  0xf1   : > { %v351_v38 = vadd.f32 %v350_v36, %v227_v18  ;;  %v371_v39 = vadd.f32 %v370_v37, %v247_v35  ;;  %v498_v40 = vpop.f32.mrb[5].mxu0  ;;  %v510_v41 = vpop.f32.mrb[5].mxu1 }
  0xf3   : > { %377 = vst.msk [vmem:[%s676_s28 + $0x10] sm:$0xff] %vm374_vm2, %v351_v38 }
  0xf4   : > { %382 = vst.msk [vmem:[%s676_s28 + $0x30] sm:$0x3] %vm381_vm3, %v371_v39  ;;  %v355_v42 = vpop.f32.mrb[6].mxu0 }
  0xf5   : > { %v356_v43 = vadd.f32 %v355_v42, %v232_v20  ;;  %v501_v44 = vpop.f32.mrb[7].mxu0 }
  0xf7   : > { %378 = vst.msk [vmem:[%s676_s28 + $0x18] sm:$0xff] %vm374_vm2, %v356_v43 }
  0xf8 PF: > { %s13_s14 = sadd.s32 1, %s565_s14   ;;  %s704_s12 = smov %s561_s13 }
  0xf9   : > { %p10_p5 = scmp.ge.s32.totalorder %s13_s14, 4   ;;  %s705_s13 = smov %s707_s15 }
  0xfb   :  { %12 = sbr.rel (!%p10_p5) target bundleno = 2 (0x2), region = 62 }

</bundles_post_ra>
